<compile_context>
chip_gen: v5e
topology: v5e:2x2
jax: 0.10.0
libtpu: 0.0.40
codegen_flags: <defaults>
</compile_context>

<pallas_src>
import math

import jax
import jax.numpy as jnp
from jax.experimental import pallas as pl
from jax.experimental.pallas import tpu as pltpu


def _round_up(x: int, m: int) -> int:
    return ((x + m - 1) // m) * m


def _rotary_packed_kernel(t_ref, w_ref, o_ref):
    """One tile of the packed frequency table.

    t_ref: (TM4, pack)      f32  -- raw coordinates, `pack` logical rows per row
    w_ref: (pack, pack*dim) f32  -- pre-scaled, pre-masked pattern rows (resident)
    o_ref: (TM4, pack*dim)  f32  -- lane-dense output tile
    """
    pack = t_ref.shape[1]
    t = t_ref[...]                      # (TM4, pack)
    w = w_ref[...]                      # (pack, LW)

    # out[r, g*dim + c] = t[r, g] * (interp * concat(inv, inv))[c]
    # Implemented as a sum of `pack` exact broadcast multiplies against masked
    # pattern rows (the masked-out terms contribute exact zeros).
    acc = t[:, 0:1] * w[0:1, :]
    for g in range(1, pack):
        acc = acc + t[:, g : g + 1] * w[g : g + 1, :]

    # Full-width (multiple-of-128-lane) unmasked stores.
    o_ref[...] = acc


def rotary_embedding(coordinates, inv_freq, *, min_freq=1.0 / 64, scale=1.0,
                     block_rows=4096):
    """JAX/Pallas equivalent of RotaryEmbedding.forward(coordinates, device).

    `block_rows` is the number of *packed* output rows per tile (sweepable);
    with dim=32 the default 4096 corresponds to 16384 logical coordinate rows
    and ~4 MiB of double-buffered output VMEM -- comfortably inside every
    chip's budget while amortizing per-grid-step pipeline overhead.
    """
    interpolation_factor = float(scale) / float(min_freq)
    half_dim = inv_freq.shape[0]
    dim = 2 * half_dim

    # --- lane packing factor -------------------------------------------------
    if dim < 128:
        pack = math.lcm(dim, 128) // dim       # lane_w becomes a multiple of 128
    else:
        pack = 1
    lane_w = pack * dim

    # --- tiny pattern matrix (interpolation factor folded in) ----------------
    pat = jnp.concatenate([inv_freq, inv_freq]).astype(jnp.float32)
    pat = pat * jnp.float32(interpolation_factor)               # (dim,)
    eye = jnp.eye(pack, dtype=jnp.float32)                      # (pack, pack)
    w = (eye[:, :, None] * pat[None, None, :]).reshape(pack, lane_w)

    # --- flatten, pad, pack the coordinates -----------------------------------
    orig_shape = coordinates.shape
    m = math.prod(orig_shape) if orig_shape else 1
    t_flat = coordinates.astype(jnp.float32).reshape(-1)        # (m,)

    m4_needed = -(-m // pack)                                   # cdiv(m, pack)
    tm4 = max(8, min(_round_up(block_rows, 8), _round_up(m4_needed, 8)))
    m4 = _round_up(m4_needed, tm4)                              # padded packed rows
    m_pad = m4 * pack

    if m_pad != m:
        t_flat = jnp.pad(t_flat, (0, m_pad - m))
    t_packed = t_flat.reshape(m4, pack)                         # (m4, pack)

    grid = (m4 // tm4,)

    out_packed = pl.pallas_call(
        _rotary_packed_kernel,
        out_shape=jax.ShapeDtypeStruct((m4, lane_w), jnp.float32),
        grid=grid,
        in_specs=[
            # coordinate tile: last dim == full array dim, second-minor % 8 == 0
            pl.BlockSpec((tm4, pack), lambda i: (i, 0)),
            # pattern matrix: full array, stays resident across the grid
            pl.BlockSpec((pack, lane_w), lambda i: (0, 0)),
        ],
        out_specs=pl.BlockSpec((tm4, lane_w), lambda i: (i, 0)),
        compiler_params=pltpu.CompilerParams(
            dimension_semantics=("parallel",),
        ),
    )(t_packed, w)

    # (m4, pack*dim) is bit-identical (row-major) to (m_pad, dim).  The final
    # reshape/slice restores the PyTorch-facing layout; consumers that accept
    # the packed form can use `out_packed` directly and skip the copy.
    out = out_packed.reshape(m_pad, dim)[:m].reshape(*orig_shape, dim)
    return out


def rotary_embedding_ref(coordinates, inv_freq, *, min_freq=1.0 / 64, scale=1.0):
    """Pure-JAX reference mirroring the PyTorch forward."""
    interpolation_factor = scale / min_freq
    t = coordinates.astype(jnp.float32) * interpolation_factor
    freqs = jnp.einsum("...i,j->...ij", t, inv_freq.astype(jnp.float32))
    return jnp.concatenate((freqs, freqs), axis=-1)


if __name__ == "__main__":
    # Module hyper-parameters (deterministic), matching __init__:
    #   inv_freq = 1 / 10000 ** (arange(0, dim, 2) / dim)
    dim = 32
    min_freq = 1.0 / 64
    scale = 1.0
    inv_freq = 1.0 / (10000.0 ** (jnp.arange(0, dim, 2, dtype=jnp.float32) / dim))

    key = jax.random.PRNGKey(0)
    k1, k2 = jax.random.split(key)

    # Case 1: small, even shape (single tile, no padding / no tail copy).
    coords1 = jax.random.uniform(k1, (2, 64), dtype=jnp.float32)
    out1 = jax.block_until_ready(
        rotary_embedding(coords1, inv_freq, min_freq=min_freq, scale=scale))
    ref1 = rotary_embedding_ref(coords1, inv_freq, min_freq=min_freq, scale=scale)
    assert out1.shape == (2, 64, dim), out1.shape
    assert out1.dtype == jnp.float32
    assert jnp.allclose(out1, ref1, atol=1e-5, rtol=1e-5)

    # Case 2: ragged size, multiple grid steps (exercises padding + pipelining).
    coords2 = jax.random.uniform(k2, (3, 1000), dtype=jnp.float32,
                                 minval=0.0, maxval=100.0)
    out2 = jax.block_until_ready(
        rotary_embedding(coords2, inv_freq, min_freq=min_freq, scale=scale,
                         block_rows=128))
    ref2 = rotary_embedding_ref(coords2, inv_freq, min_freq=min_freq, scale=scale)
    assert out2.shape == (3, 1000, dim), out2.shape
    assert jnp.allclose(out2, ref2, atol=1e-5, rtol=1e-5)

    print("KERNEL_OK")
</pallas_src>

<mosaic_0001>
module attributes {stable_mosaic.version = 11 : i64} {
  func.func @_rotary_packed_kernel(%arg0: i32, %arg1: memref<32x4xf32, #tpu.memory_space<vmem>>, %arg2: memref<4x128xf32, #tpu.memory_space<vmem>>, %arg3: memref<32x128xf32, #tpu.memory_space<vmem>>) attributes {dimension_semantics = [#tpu.dimension_semantics<parallel>], iteration_bounds = array<i64: 1>, scalar_prefetch = 0 : i64, scratch_operands = 0 : i64, tpu.core_type = #tpu.core_type<tc>, window_params = [{transform_indices = @transform_0, window_bounds = array<i64: 32, 4>}, {pipeline_mode = #tpu.pipeline_mode<synchronous>, transform_indices = @transform_1, window_bounds = array<i64: 4, 128>}, {transform_indices = @transform_2, window_bounds = array<i64: 32, 128>}]} {
    %c0 = arith.constant 0 : index
    %c0_0 = arith.constant 0 : index
    %0 = vector.load %arg1[%c0, %c0_0] : memref<32x4xf32, #tpu.memory_space<vmem>>, vector<32x4xf32>
    %c0_1 = arith.constant 0 : index
    %c0_2 = arith.constant 0 : index
    %1 = vector.load %arg2[%c0_1, %c0_2] : memref<4x128xf32, #tpu.memory_space<vmem>>, vector<4x128xf32>
    %2 = vector.extract_strided_slice %0 {offsets = [0, 0], sizes = [32, 1], strides = [1, 1]} : vector<32x4xf32> to vector<32x1xf32>
    %3 = vector.extract_strided_slice %1 {offsets = [0, 0], sizes = [1, 128], strides = [1, 1]} : vector<4x128xf32> to vector<1x128xf32>
    %4 = vector.broadcast %2 : vector<32x1xf32> to vector<32x128xf32>
    %5 = vector.broadcast %3 : vector<1x128xf32> to vector<32x128xf32>
    %6 = arith.mulf %4, %5 : vector<32x128xf32>
    %7 = vector.extract_strided_slice %0 {offsets = [0, 1], sizes = [32, 1], strides = [1, 1]} : vector<32x4xf32> to vector<32x1xf32>
    %8 = vector.extract_strided_slice %1 {offsets = [1, 0], sizes = [1, 128], strides = [1, 1]} : vector<4x128xf32> to vector<1x128xf32>
    %9 = vector.broadcast %7 : vector<32x1xf32> to vector<32x128xf32>
    %10 = vector.broadcast %8 : vector<1x128xf32> to vector<32x128xf32>
    %11 = arith.mulf %9, %10 : vector<32x128xf32>
    %12 = arith.addf %6, %11 : vector<32x128xf32>
    %13 = vector.extract_strided_slice %0 {offsets = [0, 2], sizes = [32, 1], strides = [1, 1]} : vector<32x4xf32> to vector<32x1xf32>
    %14 = vector.extract_strided_slice %1 {offsets = [2, 0], sizes = [1, 128], strides = [1, 1]} : vector<4x128xf32> to vector<1x128xf32>
    %15 = vector.broadcast %13 : vector<32x1xf32> to vector<32x128xf32>
    %16 = vector.broadcast %14 : vector<1x128xf32> to vector<32x128xf32>
    %17 = arith.mulf %15, %16 : vector<32x128xf32>
    %18 = arith.addf %12, %17 : vector<32x128xf32>
    %19 = vector.extract_strided_slice %0 {offsets = [0, 3], sizes = [32, 1], strides = [1, 1]} : vector<32x4xf32> to vector<32x1xf32>
    %20 = vector.extract_strided_slice %1 {offsets = [3, 0], sizes = [1, 128], strides = [1, 1]} : vector<4x128xf32> to vector<1x128xf32>
    %21 = vector.broadcast %19 : vector<32x1xf32> to vector<32x128xf32>
    %22 = vector.broadcast %20 : vector<1x128xf32> to vector<32x128xf32>
    %23 = arith.mulf %21, %22 : vector<32x128xf32>
    %24 = arith.addf %18, %23 : vector<32x128xf32>
    %c0_3 = arith.constant 0 : index
    %c0_4 = arith.constant 0 : index
    %25 = vector.load %arg3[%c0_3, %c0_4] : memref<32x128xf32, #tpu.memory_space<vmem>>, vector<32x128xf32>
    tpu.vector_store %arg3[%c0_3, %c0_4], %24 {strides = array<i32>} : memref<32x128xf32, #tpu.memory_space<vmem>>, vector<32x128xf32>,
    return
  }
  func.func @transform_0(%arg0: i32) -> (i32, i32) {
    %c0_i32 = arith.constant 0 : i32
    %c0_i32_0 = arith.constant 0 : i32
    return %arg0, %c0_i32 : i32, i32
  }
  func.func @transform_1(%arg0: i32) -> (i32, i32) {
    %c0_i32 = arith.constant 0 : i32
    %c0_i32_0 = arith.constant 0 : i32
    %c0_i32_1 = arith.constant 0 : i32
    return %c0_i32, %c0_i32_0 : i32, i32
  }
  func.func @transform_2(%arg0: i32) -> (i32, i32) {
    %c0_i32 = arith.constant 0 : i32
    %c0_i32_0 = arith.constant 0 : i32
    return %arg0, %c0_i32 : i32, i32
  }
}

</mosaic_0001>

<bundles_post_ra>
// kernel: tpu_custom_call.1
= control target key start
LH: loop header
LB: loop body
LE: loop exit
PB: predicated region body
PF: predicated region fallthrough
CT: control target
= control target key end

     0   :  { %v183_v2 = vmov 0   ;;  %s223_s0 = inlined_call_operand.vmem [shape: f32[32,4], index: 0, kind: input, shape index: {}]   ;;  %s224_s1 = inlined_call_operand.vmem [shape: f32[4,128], index: 1, kind: input, shape index: {}]   ;;  %s225_s2 = inlined_call_operand.hbm [shape: f32[32,128], index: 2, kind: output, shape index: {}]  }
   0x1   :  { %v14_v0 = vld [vmem:[%s223_s0 + $0x10] sm:$0xff]  ;;  %v12_v1 = vld [vmem:[%s223_s0] sm:$0xff]  ;;  %147 = vset.pattern.permute.xlu1 %v183_v2  ;;  %146 = vset.pattern.permute.xlu0 %v183_v2 }
   0x2   :  { %7 = vsyncpa [#allocation3], 0  ;;  %29 = vperm.xlu1 %147, %v14_v0   ;;  %19 = vperm.xlu0 %146, %v12_v1   ;;  %v184_v3 = vmov 1   ;;  %v15_v4 = vld [vmem:[%s223_s0 + $0x18] sm:$0xff]  ;;  %v13_v5 = vld [vmem:[%s223_s0 + $0x8] sm:$0xff]  ;;  %v185_v6 = vmov 2  }
   0x3   :  { %148 = vset.pattern.permute.xlu2 %v184_v3  ;;  %v186_v7 = vmov 3   ;;  %v16_v17 = vld [vmem:[%s224_s1] sm:$0xf]  ;;  %s187_s1 = smov [#allocation2]   ;;  %s127_s21 = sshll.u32 %s225_s2, 4  ;;  %s128_s21 = int_to_ptr.hbm [resolvable:$true] %s127_s21 }
   0x4   :  { %43 = vperm.xlu2 %148, %v12_v1   ;;  %v58_v20 = vperm.slane %v16_v17, 1  ;;  %v37_v21 = vperm.slane %v16_v17, 0  ;;  %v108_v23 = vperm.slane %v16_v17, 3  ;;  %v83_v27 = vperm.slane %v16_v17, 2  ;;  %s125_s18 = sshll.u32 %s187_s1, 4  ;;  %s188_s22 = smov 128   ;;  %s126_s18 = int_to_ptr.vmem [resolvable:$true] %s125_s18 }
   0x5   :  { %s189_s23 = smov 8  }
   0xa   :  { %34 = vperm.xlu1 %147, %v15_v4   ;;  %24 = vperm.xlu0 %146, %v13_v5  }
   0xc   :  { %47 = vperm.xlu2 %148, %v13_v5  }
  0x12   :  { %150 = vset.pattern.permute.xlu1 %v184_v3  ;;  %149 = vset.pattern.permute.xlu0 %v184_v3 }
  0x13   :  { %55 = vperm.xlu1 %150, %v15_v4   ;;  %51 = vperm.xlu0 %149, %v14_v0  }
  0x14   :  { %151 = vset.pattern.permute.xlu2 %v185_v6 }
  0x15   :  { %68 = vperm.xlu2 %151, %v12_v1  }
  0x1b   :  { %152 = vset.pattern.permute.xlu1 %v185_v6  ;;  %153 = vset.pattern.permute.xlu0 %v185_v6 }
  0x1c   :  { %72 = vperm.xlu1 %152, %v13_v5   ;;  %80 = vperm.xlu0 %153, %v15_v4  }
  0x1d   :  { %76 = vperm.xlu2 %151, %v14_v0  }
  0x24   :  { %154 = vset.pattern.permute.xlu1 %v186_v7  ;;  %156 = vset.pattern.permute.xlu0 %v186_v7 }
  0x25   :  { %93 = vperm.xlu1 %154, %v12_v1   ;;  %155 = vset.pattern.permute.xlu2 %v186_v7 }
  0x26   :  { %97 = vperm.xlu2 %155, %v13_v5  }
  0x2d   :  { %101 = vperm.xlu1 %154, %v14_v0  }
  0x2e   :  { %105 = vperm.xlu2 %155, %v15_v4  }
  0x5e   :  { %v44_v8 = vpop.permute.xlu2 %43 }
  0x5f   :  { %v59_v37 = vmul.f32 %v58_v20, %v44_v8 }
  0x66   :  { %v48_v9 = vpop.permute.xlu2 %47 }
  0x67   :  { %v60_v25 = vmul.f32 %v58_v20, %v48_v9 }
  0x6f   :  { %v69_v10 = vpop.permute.xlu2 %68 }
  0x70   :  { %v84_v44 = vmul.f32 %v83_v27, %v69_v10 }
  0x74   :  { %v30_v11 = vpop.permute.xlu1 %29  ;;  %v20_v12 = vpop.permute.xlu0 %19 }
  0x75   :  { %v38_v38 = vmul.f32 %v37_v21, %v20_v12  ;;  %v40_v49 = vmul.f32 %v37_v21, %v30_v11 }
  0x77   :  { %v77_v13 = vpop.permute.xlu2 %76  ;;  %v63_v43 = vadd.f32 %v59_v37, %v38_v38 }
  0x78   :  { %v86_v51 = vmul.f32 %v83_v27, %v77_v13 }
  0x79   :  { %v88_v46 = vadd.f32 %v84_v44, %v63_v43 }
  0x7c   :  { %v35_v14 = vpop.permute.xlu1 %34  ;;  %v25_v15 = vpop.permute.xlu0 %24 }
  0x7d   :  { %v39_v22 = vmul.f32 %v37_v21, %v25_v15  ;;  %v41_v28 = vmul.f32 %v37_v21, %v35_v14 }
  0x7f   :  { %v64_v29 = vadd.f32 %v60_v25, %v39_v22 }
  0x80   :  { %v98_v16 = vpop.permute.xlu2 %97 }
  0x81   :  { %v110_v30 = vmul.f32 %v108_v23, %v98_v16 }
  0x85   :  { %v56_v18 = vpop.permute.xlu1 %55  ;;  %v52_v19 = vpop.permute.xlu0 %51 }
  0x86   :  { %v62_v24 = vmul.f32 %v58_v20, %v56_v18  ;;  %v61_v47 = vmul.f32 %v58_v20, %v52_v19 }
  0x88   :  { %v106_v26 = vpop.permute.xlu2 %105  ;;  %v66_v33 = vadd.f32 %v62_v24, %v41_v28  ;;  %v65_v52 = vadd.f32 %v61_v47, %v40_v49 }
  0x89   :  { %v112_v36 = vmul.f32 %v108_v23, %v106_v26 }
  0x8a   :  { %v90_v54 = vadd.f32 %v86_v51, %v65_v52 }
  0x8e   :  { %v73_v31 = vpop.permute.xlu1 %72  ;;  %v81_v32 = vpop.permute.xlu0 %80 }
  0x8f   :  { %v85_v34 = vmul.f32 %v83_v27, %v73_v31  ;;  %v87_v35 = vmul.f32 %v83_v27, %v81_v32 }
  0x91   :  { %v89_v39 = vadd.f32 %v85_v34, %v64_v29  ;;  %v91_v40 = vadd.f32 %v87_v35, %v66_v33 }
  0x93   :  { %v114_v41 = vadd.f32 %v110_v30, %v89_v39  ;;  %v116_v42 = vadd.f32 %v112_v36, %v91_v40 }
  0x95   :  { %118 = vst [vmem:[#allocation2 + $0x8] sm:$0xff] %v114_v41 }
  0x96   :  { %120 = vst [vmem:[#allocation2 + $0x18] sm:$0xff] %v116_v42 }
  0x97   :  { %v94_v45 = vpop.permute.xlu1 %93 }
  0x98   :  { %v109_v48 = vmul.f32 %v108_v23, %v94_v45 }
  0x9a   :  { %v113_v50 = vadd.f32 %v109_v48, %v88_v46 }
  0x9c   :  { %117 = vst [vmem:[#allocation2] sm:$0xff] %v113_v50 }
  0x9f   :  { %v102_v53 = vpop.permute.xlu1 %101 }
  0xa0   :  { %v111_v55 = vmul.f32 %v108_v23, %v102_v53 }
  0xa2   :  { %v115_v56 = vadd.f32 %v111_v55, %v90_v54 }
  0xa4   :  { %119 = vst [vmem:[#allocation2 + $0x10] sm:$0xff] %v115_v56 }
  0xa5   :  { %133 = dma.vmem_to_hbm [thread:$0]  %s126_s18, 512, %s128_s21, [#allocation3], %s188_s22, %s188_s22, %s189_s23  }
  0xa6   :  { %181 = dma.done.wait [#allocation3], 512  }
  0xa7   :  { %182 = vsyncadd [#allocation3], 4294966784 }
  0xa8   :  { %138 = vsyncpa [#allocation3], 1 }

</bundles_post_ra>
